<compile_context>
chip_gen: v7x
topology: tpu7x:2x2x1
jax: 0.10.0
libtpu: 0.0.40
codegen_flags: <defaults>
</compile_context>

<pallas_src>
import math
import numpy as np
import jax
import jax.numpy as jnp
from jax.experimental import pallas as pl
from jax.experimental.pallas import tpu as pltpu


# ----------------------------------------------------------------------------
# Deterministic Gabor filter generation (mirrors generate_gabor_filter_weights)
# ----------------------------------------------------------------------------
def generate_gabor_filter_weights(sz, l_theta, l_sfs, l_phase, contrast=1.0):
    """Returns (n_theta * n_sfs * n_phase, sz, sz) float32 gabor filters."""
    half = (sz - 1) / 2.0
    ys, xs = np.meshgrid(np.arange(sz, dtype=np.float64) - half,
                         np.arange(sz, dtype=np.float64) - half,
                         indexing="ij")
    sigma = max(0.5 * half, 1.0)  # deterministic envelope width
    filters = []
    for theta in l_theta:
        for sf in l_sfs:
            for phase in l_phase:
                xr = xs * math.cos(theta) + ys * math.sin(theta)
                yr = -xs * math.sin(theta) + ys * math.cos(theta)
                env = np.exp(-(xr ** 2 + yr ** 2) / (2.0 * sigma ** 2))
                carrier = np.cos(2.0 * math.pi * sf * xr + phase)
                filters.append((contrast * env * carrier).astype(np.float32))
    return np.stack(filters, axis=0)


# ----------------------------------------------------------------------------
# Kernel: sz_max accumulated MXU matmuls, static slices only.
# ----------------------------------------------------------------------------
def _make_kernel(sz_max, H):
    def kernel(x_ref, w_ref, o_ref):
        # x_ref: (1, Hp_pad, Wp_pad)   channel-summed, zero-padded image
        # w_ref: (sz_max, Wp_pad, O*W) banded (Toeplitz-over-width) weights
        # o_ref: (1, H, O*W)           output, row-major over (i, (o, j))
        acc = jnp.dot(x_ref[0, 0:H, :], w_ref[0],
                      preferred_element_type=jnp.float32)
        for u in range(1, sz_max):
            acc = acc + jnp.dot(x_ref[0, u:u + H, :], w_ref[u],
                                preferred_element_type=jnp.float32)
        o_ref[0, :, :] = acc
    return kernel


# ----------------------------------------------------------------------------
# GaborFilterBank forward
# ----------------------------------------------------------------------------
class GaborFilterBankPallas:
    def __init__(self, in_channels, l_filter_size, l_theta, l_sfs, l_phase,
                 padding_mode="zeros", contrast=1.0, stride=1,
                 compute_dtype=jnp.float32):
        assert padding_mode == "zeros", "only zero padding is implemented"
        assert stride == 1, "only stride=1 is implemented"
        self.in_channels = int(in_channels)
        self.l_filter_size = [int(i) for i in l_filter_size]
        # Odd sizes => all per-size conv outputs share (H, W); even sizes would
        # already break torch.cat in the original module.
        assert all(sz % 2 == 1 for sz in self.l_filter_size), \
            "odd filter sizes required"
        self.compute_dtype = compute_dtype
        n_per_size = len(l_theta) * len(l_sfs) * len(l_phase)
        self.out_dim = len(self.l_filter_size) * n_per_size
        self.sz_max = max(self.l_filter_size)
        self.p_max = (self.sz_max - 1) // 2

        emb_list = []
        self.weights_ref = []  # per-size broadcast OIHW weights (reference only)
        for sz in self.l_filter_size:
            fw = generate_gabor_filter_weights(sz, l_theta, l_sfs, l_phase,
                                               contrast=contrast)  # (Os, sz, sz)
            # Centre-embed into the max-size tap grid -> exact with p_max pad.
            d = self.p_max - (sz - 1) // 2
            emb = np.zeros((fw.shape[0], self.sz_max, self.sz_max), np.float32)
            emb[:, d:d + sz, d:d + sz] = fw
            emb_list.append(emb)
            # PyTorch copies (Os, sz, sz) into (Os, C, sz, sz): broadcast over C.
            w_ochw = np.broadcast_to(
                fw[:, None, :, :], (fw.shape[0], in_channels, sz, sz)
            ).astype(np.float32)
            self.weights_ref.append((sz, jnp.asarray(w_ochw)))

        self._w_emb = np.concatenate(emb_list, axis=0)   # (O, sz_max, sz_max)
        self._wmat_cache = {}

    # Banded weight slabs: S[u, j+v, o*W+j] = w_emb[o, u, v].
    def _banded_weights(self, W):
        if W in self._wmat_cache:
            return self._wmat_cache[W]
        O, sz = self.out_dim, self.sz_max
        Wp = W + 2 * self.p_max
        Wp_pad = ((Wp + 127) // 128) * 128
        wmat = np.zeros((sz, Wp_pad, O * W), np.float32)
        j = np.arange(W)
        for u in range(sz):
            for v in range(sz):
                for o in range(O):
                    wmat[u, j + v, o * W + j] = self._w_emb[o, u, v]
        res = jnp.asarray(wmat)
        self._wmat_cache[W] = res
        return res

    def __call__(self, x_nchw):
        N, C, H, W = x_nchw.shape
        assert C == self.in_channels
        O, p, sz = self.out_dim, self.p_max, self.sz_max
        Hp_pad = ((H + 2 * p + 7) // 8) * 8          # sublane-aligned rows
        Wp_pad = ((W + 2 * p + 127) // 128) * 128    # lane-aligned contraction
        OW = O * W

        # Exact channel-sum (weights are broadcast over C) + single padded copy.
        x_sum = jnp.sum(x_nchw.astype(jnp.float32), axis=1)          # (N, H, W)
        x_pad = jnp.pad(x_sum, ((0, 0),
                                (p, Hp_pad - H - p),
                                (p, Wp_pad - W - p)))
        x_pad = x_pad.astype(self.compute_dtype)
        wmat = self._banded_weights(W).astype(self.compute_dtype)

        itemsize = jnp.dtype(self.compute_dtype).itemsize
        cost = pl.CostEstimate(
            flops=int(2 * N * sz * H * Wp_pad * OW),
            transcendentals=0,
            bytes_accessed=int(N * Hp_pad * Wp_pad * itemsize
                               + sz * Wp_pad * OW * itemsize
                               + N * H * OW * 4))

        out_how = pl.pallas_call(
            _make_kernel(sz, H),
            out_shape=jax.ShapeDtypeStruct((N, H, OW), jnp.float32),
            grid=(N,),
            in_specs=[
                pl.BlockSpec((1, Hp_pad, Wp_pad), lambda n: (n, 0, 0)),
                # Constant block index -> fetched once, stays resident in VMEM.
                pl.BlockSpec((sz, Wp_pad, OW), lambda n: (0, 0, 0)),
            ],
            out_specs=pl.BlockSpec((1, H, OW), lambda n: (n, 0, 0)),
            compiler_params=pltpu.CompilerParams(
                dimension_semantics=("parallel",)),
            cost_estimate=cost,
        )(x_pad, wmat)

        # (N, H, (O, W)) -> NCHW: free reshape + tiny non-minor-dim transpose.
        return out_how.reshape(N, H, O, W).transpose(0, 2, 1, 3)


# ----------------------------------------------------------------------------
# Reference (pure JAX, matches the PyTorch module) for verification
# ----------------------------------------------------------------------------
def reference_forward(x_nchw, weights_ref):
    outs = []
    for sz, w_ochw in weights_ref:
        p = (sz - 1) // 2
        y = jax.lax.conv_general_dilated(
            x_nchw, w_ochw, window_strides=(1, 1),
            padding=[(p, p), (p, p)],
            dimension_numbers=("NCHW", "OIHW", "NCHW"),
            precision=jax.lax.Precision.HIGHEST)
        outs.append(y)
    return jnp.concatenate(outs, axis=1)


if __name__ == "__main__":
    N, C, H, W = 2, 4, 16, 16
    l_filter_size = [5, 7]
    l_theta = [0.0, math.pi / 2]
    l_sfs = [0.1, 0.2]
    l_phase = [0.0, math.pi / 2]

    key = jax.random.PRNGKey(0)
    x = jax.random.normal(key, (N, C, H, W), dtype=jnp.float32)

    expected_channels = (len(l_filter_size) * len(l_theta)
                         * len(l_sfs) * len(l_phase))

    # f32 path: tight check against the conv reference (PyTorch semantics).
    bank = GaborFilterBankPallas(C, l_filter_size, l_theta, l_sfs, l_phase,
                                 contrast=1.0, compute_dtype=jnp.float32)
    out = jax.block_until_ready(bank(x))
    assert out.shape == (N, expected_channels, H, W), out.shape

    ref = jax.block_until_ready(reference_forward(x, bank.weights_ref))
    np.testing.assert_allclose(np.asarray(out), np.asarray(ref),
                               rtol=1e-3, atol=1e-3)

    # bf16 MXU-input path (recommended on v6e/v7x), f32 accumulation.
    bank_bf16 = GaborFilterBankPallas(C, l_filter_size, l_theta, l_sfs, l_phase,
                                      contrast=1.0, compute_dtype=jnp.bfloat16)
    out_bf16 = jax.block_until_ready(bank_bf16(x))
    assert out_bf16.shape == (N, expected_channels, H, W)
    np.testing.assert_allclose(np.asarray(out_bf16), np.asarray(ref),
                               rtol=0.1, atol=0.5)

    print("KERNEL_OK")
</pallas_src>

<mosaic_0001>
module attributes {stable_mosaic.version = 11 : i64} {
  func.func @kernel(%arg0: i32, %arg1: memref<1x24x128xf32, #tpu.memory_space<vmem>>, %arg2: memref<7x128x256xf32, #tpu.memory_space<vmem>>, %arg3: memref<1x16x256xf32, #tpu.memory_space<vmem>>) attributes {dimension_semantics = [#tpu.dimension_semantics<parallel>], iteration_bounds = array<i64: 2>, scalar_prefetch = 0 : i64, scratch_operands = 0 : i64, tpu.core_type = #tpu.core_type<tc>, window_params = [{transform_indices = @transform_0, window_bounds = array<i64: 1, 24, 128>}, {pipeline_mode = #tpu.pipeline_mode<synchronous>, transform_indices = @transform_1, window_bounds = array<i64: 7, 128, 256>}, {transform_indices = @transform_2, window_bounds = array<i64: 1, 16, 256>}]} {
    %c0 = arith.constant 0 : index
    %c0_0 = arith.constant 0 : index
    %c0_1 = arith.constant 0 : index
    %0 = vector.load %arg1[%c0, %c0_0, %c0_1] : memref<1x24x128xf32, #tpu.memory_space<vmem>>, vector<1x16x128xf32>
    %1 = vector.shape_cast %0 : vector<1x16x128xf32> to vector<16x128xf32>
    %c0_2 = arith.constant 0 : index
    %c0_3 = arith.constant 0 : index
    %c0_4 = arith.constant 0 : index
    %2 = vector.load %arg2[%c0_2, %c0_3, %c0_4] : memref<7x128x256xf32, #tpu.memory_space<vmem>>, vector<1x128x256xf32>
    %3 = vector.shape_cast %2 : vector<1x128x256xf32> to vector<128x256xf32>
    %cst = arith.constant dense<0.000000e+00> : vector<16x256xf32>
    %4 = tpu.matmul %1, %3, %cst {dimension_numbers = #tpu.dot_dimension_numbers<[1], [0], [0], [1], [0, 0, 1, 1], [], []>} : vector<16x128xf32>, vector<128x256xf32>, vector<16x256xf32> -> vector<16x256xf32>
    %c0_5 = arith.constant 0 : index
    %c1 = arith.constant 1 : index
    %c0_6 = arith.constant 0 : index
    %5 = vector.load %arg1[%c0_5, %c1, %c0_6] : memref<1x24x128xf32, #tpu.memory_space<vmem>>, vector<1x16x128xf32>
    %6 = vector.shape_cast %5 : vector<1x16x128xf32> to vector<16x128xf32>
    %c1_7 = arith.constant 1 : index
    %c0_8 = arith.constant 0 : index
    %c0_9 = arith.constant 0 : index
    %7 = vector.load %arg2[%c1_7, %c0_8, %c0_9] : memref<7x128x256xf32, #tpu.memory_space<vmem>>, vector<1x128x256xf32>
    %8 = vector.shape_cast %7 : vector<1x128x256xf32> to vector<128x256xf32>
    %cst_10 = arith.constant dense<0.000000e+00> : vector<16x256xf32>
    %9 = tpu.matmul %6, %8, %cst_10 {dimension_numbers = #tpu.dot_dimension_numbers<[1], [0], [0], [1], [0, 0, 1, 1], [], []>} : vector<16x128xf32>, vector<128x256xf32>, vector<16x256xf32> -> vector<16x256xf32>
    %10 = arith.addf %4, %9 : vector<16x256xf32>
    %c0_11 = arith.constant 0 : index
    %c2 = arith.constant 2 : index
    %c0_12 = arith.constant 0 : index
    %11 = vector.load %arg1[%c0_11, %c2, %c0_12] : memref<1x24x128xf32, #tpu.memory_space<vmem>>, vector<1x16x128xf32>
    %12 = vector.shape_cast %11 : vector<1x16x128xf32> to vector<16x128xf32>
    %c2_13 = arith.constant 2 : index
    %c0_14 = arith.constant 0 : index
    %c0_15 = arith.constant 0 : index
    %13 = vector.load %arg2[%c2_13, %c0_14, %c0_15] : memref<7x128x256xf32, #tpu.memory_space<vmem>>, vector<1x128x256xf32>
    %14 = vector.shape_cast %13 : vector<1x128x256xf32> to vector<128x256xf32>
    %cst_16 = arith.constant dense<0.000000e+00> : vector<16x256xf32>
    %15 = tpu.matmul %12, %14, %cst_16 {dimension_numbers = #tpu.dot_dimension_numbers<[1], [0], [0], [1], [0, 0, 1, 1], [], []>} : vector<16x128xf32>, vector<128x256xf32>, vector<16x256xf32> -> vector<16x256xf32>
    %16 = arith.addf %10, %15 : vector<16x256xf32>
    %c0_17 = arith.constant 0 : index
    %c3 = arith.constant 3 : index
    %c0_18 = arith.constant 0 : index
    %17 = vector.load %arg1[%c0_17, %c3, %c0_18] : memref<1x24x128xf32, #tpu.memory_space<vmem>>, vector<1x16x128xf32>
    %18 = vector.shape_cast %17 : vector<1x16x128xf32> to vector<16x128xf32>
    %c3_19 = arith.constant 3 : index
    %c0_20 = arith.constant 0 : index
    %c0_21 = arith.constant 0 : index
    %19 = vector.load %arg2[%c3_19, %c0_20, %c0_21] : memref<7x128x256xf32, #tpu.memory_space<vmem>>, vector<1x128x256xf32>
    %20 = vector.shape_cast %19 : vector<1x128x256xf32> to vector<128x256xf32>
    %cst_22 = arith.constant dense<0.000000e+00> : vector<16x256xf32>
    %21 = tpu.matmul %18, %20, %cst_22 {dimension_numbers = #tpu.dot_dimension_numbers<[1], [0], [0], [1], [0, 0, 1, 1], [], []>} : vector<16x128xf32>, vector<128x256xf32>, vector<16x256xf32> -> vector<16x256xf32>
    %22 = arith.addf %16, %21 : vector<16x256xf32>
    %c0_23 = arith.constant 0 : index
    %c4 = arith.constant 4 : index
    %c0_24 = arith.constant 0 : index
    %23 = vector.load %arg1[%c0_23, %c4, %c0_24] : memref<1x24x128xf32, #tpu.memory_space<vmem>>, vector<1x16x128xf32>
    %24 = vector.shape_cast %23 : vector<1x16x128xf32> to vector<16x128xf32>
    %c4_25 = arith.constant 4 : index
    %c0_26 = arith.constant 0 : index
    %c0_27 = arith.constant 0 : index
    %25 = vector.load %arg2[%c4_25, %c0_26, %c0_27] : memref<7x128x256xf32, #tpu.memory_space<vmem>>, vector<1x128x256xf32>
    %26 = vector.shape_cast %25 : vector<1x128x256xf32> to vector<128x256xf32>
    %cst_28 = arith.constant dense<0.000000e+00> : vector<16x256xf32>
    %27 = tpu.matmul %24, %26, %cst_28 {dimension_numbers = #tpu.dot_dimension_numbers<[1], [0], [0], [1], [0, 0, 1, 1], [], []>} : vector<16x128xf32>, vector<128x256xf32>, vector<16x256xf32> -> vector<16x256xf32>
    %28 = arith.addf %22, %27 : vector<16x256xf32>
    %c0_29 = arith.constant 0 : index
    %c5 = arith.constant 5 : index
    %c0_30 = arith.constant 0 : index
    %29 = vector.load %arg1[%c0_29, %c5, %c0_30] : memref<1x24x128xf32, #tpu.memory_space<vmem>>, vector<1x16x128xf32>
    %30 = vector.shape_cast %29 : vector<1x16x128xf32> to vector<16x128xf32>
    %c5_31 = arith.constant 5 : index
    %c0_32 = arith.constant 0 : index
    %c0_33 = arith.constant 0 : index
    %31 = vector.load %arg2[%c5_31, %c0_32, %c0_33] : memref<7x128x256xf32, #tpu.memory_space<vmem>>, vector<1x128x256xf32>
    %32 = vector.shape_cast %31 : vector<1x128x256xf32> to vector<128x256xf32>
    %cst_34 = arith.constant dense<0.000000e+00> : vector<16x256xf32>
    %33 = tpu.matmul %30, %32, %cst_34 {dimension_numbers = #tpu.dot_dimension_numbers<[1], [0], [0], [1], [0, 0, 1, 1], [], []>} : vector<16x128xf32>, vector<128x256xf32>, vector<16x256xf32> -> vector<16x256xf32>
    %34 = arith.addf %28, %33 : vector<16x256xf32>
    %c0_35 = arith.constant 0 : index
    %c6 = arith.constant 6 : index
    %c0_36 = arith.constant 0 : index
    %35 = vector.load %arg1[%c0_35, %c6, %c0_36] : memref<1x24x128xf32, #tpu.memory_space<vmem>>, vector<1x16x128xf32>
    %36 = vector.shape_cast %35 : vector<1x16x128xf32> to vector<16x128xf32>
    %c6_37 = arith.constant 6 : index
    %c0_38 = arith.constant 0 : index
    %c0_39 = arith.constant 0 : index
    %37 = vector.load %arg2[%c6_37, %c0_38, %c0_39] : memref<7x128x256xf32, #tpu.memory_space<vmem>>, vector<1x128x256xf32>
    %38 = vector.shape_cast %37 : vector<1x128x256xf32> to vector<128x256xf32>
    %cst_40 = arith.constant dense<0.000000e+00> : vector<16x256xf32>
    %39 = tpu.matmul %36, %38, %cst_40 {dimension_numbers = #tpu.dot_dimension_numbers<[1], [0], [0], [1], [0, 0, 1, 1], [], []>} : vector<16x128xf32>, vector<128x256xf32>, vector<16x256xf32> -> vector<16x256xf32>
    %40 = arith.addf %34, %39 : vector<16x256xf32>
    %c0_41 = arith.constant 0 : index
    %c0_42 = arith.constant 0 : index
    %c0_43 = arith.constant 0 : index
    %41 = vector.load %arg3[%c0_41, %c0_42, %c0_43] : memref<1x16x256xf32, #tpu.memory_space<vmem>>, vector<1x16x256xf32>
    %42 = vector.shape_cast %41 : vector<1x16x256xf32> to vector<16x256xf32>
    %43 = vector.shape_cast %40 : vector<16x256xf32> to vector<1x16x256xf32>
    tpu.vector_store %arg3[%c0_41, %c0_42, %c0_43], %43 {strides = array<i32>} : memref<1x16x256xf32, #tpu.memory_space<vmem>>, vector<1x16x256xf32>,
    return
  }
  func.func @transform_0(%arg0: i32) -> (i32, i32, i32) {
    %c0_i32 = arith.constant 0 : i32
    %c0_i32_0 = arith.constant 0 : i32
    %c0_i32_1 = arith.constant 0 : i32
    return %arg0, %c0_i32, %c0_i32_0 : i32, i32, i32
  }
  func.func @transform_1(%arg0: i32) -> (i32, i32, i32) {
    %c0_i32 = arith.constant 0 : i32
    %c0_i32_0 = arith.constant 0 : i32
    %c0_i32_1 = arith.constant 0 : i32
    %c0_i32_2 = arith.constant 0 : i32
    return %c0_i32, %c0_i32_0, %c0_i32_1 : i32, i32, i32
  }
  func.func @transform_2(%arg0: i32) -> (i32, i32, i32) {
    %c0_i32 = arith.constant 0 : i32
    %c0_i32_0 = arith.constant 0 : i32
    %c0_i32_1 = arith.constant 0 : i32
    return %arg0, %c0_i32, %c0_i32_0 : i32, i32, i32
  }
}

</mosaic_0001>

<bundles_post_ra>
// kernel: tpu_custom_call.1
= control target key start
LH: loop header
LB: loop body
LE: loop exit
PB: predicated region body
PF: predicated region fallthrough
CT: control target
= control target key end

     0   :  { %7 = vsyncpa [#allocation3], 0  ;;  %s1813_s0 = inlined_call_operand.hbm [shape: f32[2,24,128], index: 0, kind: input, shape index: {}]   ;;  %s1814_s1 = inlined_call_operand.hbm [shape: f32[7,128,256], index: 1, kind: input, shape index: {}]   ;;  %s1815_s2 = inlined_call_operand.hbm [shape: f32[2,16,256], index: 2, kind: output, shape index: {}]  }
   0x1   :  { %9 = vsyncpa [#allocation3 + $0x1], 0 }
   0x2   :  { %10 = vsyncpa [#allocation6], 0 }
   0x3   :  { %11 = vsyncpa [#allocation4], 0 }
   0x4   :  { %13 = vsyncpa [#allocation4 + $0x1], 0  ;;  %s1581_s9 = smov 0   ;;  %s1583_s10 = smov 0  }
   0x5   :  { %s1585_s11 = smov 0   ;;  %s1587_s12 = smov 0  }
   0x6 LB: > { %s1602_s13 = sadd.s32 4294967295, %s1554_s12   ;;  %s1081_s14 = sadd.s32 4294967294, %s1554_s12   ;;  %s1554_s12 = sphi %s1587_s12, %s1835_s12   ;;  %s1550_s11 = sphi %s1585_s11, %s1834_s11   ;;  %s1546_s10 = sphi %s1583_s10, %s1833_s10   ;;  %s1542_s9 = sphi %s1581_s9, %s1832_s9  }
   0x7   : > { %p39_p0 = scmp.ne.s32.totalorder %s1546_s10, %s1542_s9  ;;  %p1816_p1 = scmp.eq.s32.totalorder %s1602_s13, 0 }
   0x8   : > { %p90_p3 = scmp.eq.s32.totalorder %s1081_s14, 1  ;;  %p1082_p5 = scmp.ge.s32.totalorder %s1554_s12, 1 }
   0x9   : > { %p1611_p4 = por %p1816_p1, %p39_p0  ;;  %p97_p7 = scmp.lt.s32.totalorder %s1554_s12, 3 }
   0xa   : > { %p1616_p6 = por %p90_p3, %p39_p0  ;;  %s1556_s18 = smov [#allocation5]  }
   0xb   : > { %s1819_s15 = scalar_select %p1611_p4, 1, 0 }
   0xc   : > { %s1820_s16 = scalar_select %p1616_p6, 1, 0 }
   0xd   : > { %p1621_p8 = pnand %p1082_p5, %p97_p7  ;;  %s109_s19 = sshll.u32 %s1556_s18, 4  ;;  %s1625_s19 = int_to_ptr.vmem [resolvable:$true] %s109_s19 }
   0xe   : > { %s1637_s21 = sadd.s32 1, %s1554_s12   ;;  %s26_s22 = sadd.s32 1, %s1550_s11 }
   0xf   : > { %s1821_s17 = scalar_select %p1621_p8, 1, 0 }
  0x10   : > { %p1370_p9 = pneg %p1621_p8  ;;  %s23_s23 = ssub.s32 %s1554_s12, %s1637_s21 }
  0x11   : > { %s1426_s26 = scalar_lea.hbm %s1814_s1, 28672 }
  0x12   : > { %p1632_p11 = pnand %p1370_p9, %p1816_p1  ;;  %p1427_p12 = scmp.ne.s32.totalorder %s1814_s1, %s1426_s26 }
  0x13   : > { %p1433_p5 = scmp.lt.u32.totalorder %s1426_s26, %s1814_s1 }
  0x14   : > { %p1428_p13 = pneg %p1632_p11 }
  0x16   : > { %p1429_p0 = pnand %p1428_p13, %p1427_p12 }
  0x18   : > { %p1430_p3 = pneg %p1429_p0 }
  0x1a   : > { %p1435_p7 = pnand %p1433_p5, %p1430_p3 }
  0x1c   : > { %1438 = shalt.err (!%p1435_p7)
}
  0x1d   : > { %s1439_s3 = scalar_lea.vmem %s1625_s19, 28672  ;;  %p1447_p2 = scmp.lt.s32.totalorder %s1625_s19, %s1625_s19 }
  0x1e   : > { %p1440_p9 = scmp.ne.s32.totalorder %s1625_s19, %s1439_s3  ;;  %p1448_p6 = scmp.lt.s32.totalorder %s1439_s3, %s1439_s3 }
  0x20   : > { %p1442_p10 = pnand %p1440_p9, %p1428_p13  ;;  %p1449_p4 = por %p1448_p6, %p1447_p2 }
  0x22   : > { %p1443_p1 = pneg %p1442_p10 }
  0x24   : > { %p1450_p8 = pnand %p1449_p4, %p1443_p1 }
  0x26   : > { %1453 = shalt.err (!%p1450_p8)
}
  0x27   : > { %s1557_s4 = smov 256   ;;  %s1558_s5 = smov 16  }
  0x28   : > { %1373 = dma.hbm_to_vmem [thread:$0]  (!%p1632_p11), %s1814_s1, 28672, %s1625_s19, [#allocation6], %s1557_s4, %s1557_s4, %s1558_s5  }
  0x29   : > { %p24_p2 = scmp.eq.s32.totalorder %s23_s23, 0  ;;  %p33_p1 = scmp.ne.s32.totalorder %s1550_s11, %s1546_s10 }
  0x2a   : > { %p34_p4 = scmp.eq.s32.totalorder %s1554_s12, 0  ;;  %p1383_p6 = scmp.lt.s32.totalorder %s1554_s12, 2 }
  0x2b   : > { %s1668_s8 = scalar_select %p24_p2, %s1550_s11, %s26_s22  }
  0x2c   : > { %p35_p8 = por %p34_p4, %p33_p1  ;;  %p1823_p10 = scmp.eq.s32.totalorder %s1602_s13, 1 }
  0x2d   : > { %s123_s18 = sand.u32 1, %s1550_s11   ;;  %s1360_s24 = smul.u32 384, %s1554_s12 }
  0x2e   : > { %p1672_p12 = por %p1823_p10, %p33_p1  ;;  %s1359_s25 = smul.u32 24, %s123_s18 }
  0x2f   : > { %s1681_s27 = scalar_lea.hbm %s1813_s0, %s1360_s24  ;;  %p1683_p11 = pnand %p1383_p6, %p35_p8 }
  0x30   : > { %s127_s22 = scalar_lea.vmem [#allocation2], %s1359_s25  ;;  %s1689_s28 = scalar_lea.sflag [#allocation3], %s123_s18 }
  0x31   : > { %s134_s23 = sshll.u32 %s127_s22, 4  ;;  %s1454_s29 = scalar_lea.hbm %s1681_s27, 384  ;;  %s1687_s23 = int_to_ptr.vmem [resolvable:$true] %s134_s23 }
  0x32   : > { %p1455_p13 = scmp.ne.s32.totalorder %s1681_s27, %s1454_s29  ;;  %p1456_p0 = pneg %p1683_p11 }
  0x33   : > { %s1459_s4 = scalar_lea.hbm %s1813_s0, 768  ;;  %p1460_p7 = scmp.lt.u32.totalorder %s1681_s27, %s1813_s0 }
  0x34   : > { %p1457_p3 = pnand %p1456_p0, %p1455_p13  ;;  %p1461_p9 = scmp.lt.u32.totalorder %s1459_s4, %s1454_s29 }
  0x35   : > { %p1463_p1 = scmp.lt.u32.totalorder %s1454_s29, %s1681_s27 }
  0x36   : > { %p1458_p5 = pneg %p1457_p3  ;;  %p1462_p2 = por %p1461_p9, %p1460_p7 }
  0x38   : > { %p1464_p4 = por %p1463_p1, %p1462_p2 }
  0x3a   : > { %p1465_p6 = pnand %p1464_p4, %p1458_p5 }
  0x3c   : > { %1468 = shalt.err (!%p1465_p6)
}
  0x3d   : > { %s1469_s7 = scalar_lea.vmem %s1687_s23, 384  ;;  %s1559_s18 = smov [#allocation2]  }
  0x3e   : > { %p1470_p8 = scmp.ne.s32.totalorder %s1687_s23, %s1469_s7  ;;  %s1474_s24 = sshll.u32 %s1559_s18, 4  ;;  %s1475_s24 = int_to_ptr.vmem [resolvable:$false] %s1474_s24 }
  0x3f   : > { %s1476_s25 = scalar_lea.vmem %s1475_s24, 768  ;;  %p1477_p3 = scmp.lt.s32.totalorder %s1687_s23, %s1475_s24 }
  0x40   : > { %p1472_p10 = pnand %p1470_p8, %p1456_p0  ;;  %p1478_p7 = scmp.lt.s32.totalorder %s1476_s25, %s1469_s7 }
  0x42   : > { %p1473_p13 = pneg %p1472_p10  ;;  %p1479_p9 = por %p1478_p7, %p1477_p3 }
  0x44   : > { %p1480_p2 = pnand %p1479_p9, %p1473_p13 }
  0x46   : > { %1483 = shalt.err (!%p1480_p2)
}
  0x47   : > { %s1560_s20 = smov 128   ;;  %s1561_s26 = smov 8  }
  0x48   : > { %1377 = dma.hbm_to_vmem [thread:$0]  (!%p1683_p11), %s1681_s27, 384, %s1687_s23, %s1689_s28, %s1560_s20, %s1560_s20, %s1561_s26  }
  0x49   : > { %p1826_p0 = scmp.ne.s32.totalorder %s1821_s17, 0 }
  0x4a   : > { %s1720_s22 = sand.u32 (!%p1826_p0), 1, %s1546_s10   ;;  %p1827_p5 = scmp.ne.s32.totalorder (!%p1826_p0), %s1819_s15, 0 }
  0x4b   : > { %146 = sbr.rel (%p1826_p0) target bundleno = 449 (0x1c1), region = 28  ;;  %s149_s30 = scalar_lea.sflag (!%p1826_p0), [#allocation3], %s1720_s22 }
  0x4c   : > { %s1361_s29 = smul.u32 (!%p1826_p0), 24, %s1720_s22 }
  0x4e   : > { %s1724_s3 = scalar_lea.vmem (!%p1826_p0), [#allocation2], %s1361_s29 }
  0x52   : > { %1529 = dma.done.wait (%p1827_p5), %s149_s30, 384  }
  0x53   : > { %1531 = vsyncadd (%p1827_p5), %s149_s30, 4294966912  ;;  %p1828_p11 = scmp.eq.s32.totalorder %s1602_s13, 0 }
  0x55   : > { %1533 = dma.done.wait (%p1828_p11), [#allocation6], 28672   ;;  %p1829_p1 = pmov %p1828_p11 }
  0x56   : > { %v1562_v0 = vmov 0.0   ;;  %v215_v1 = vld [vmem:[#allocation5 + $0x108] sm:$0xff]  ;;  %v217_v2 = vld [vmem:[#allocation5 + $0x118] sm:$0xff]  ;;  %v214_v6 = vld [vmem:[#allocation5 + $0x100] sm:$0xff]  ;;  %s1088_s15 = sshll.u32 %s1720_s22, 5  ;;  %s1094_s19 = sshll.u32 %s1602_s13, 9 }
  0x57   : > { %1535 = vsyncadd (%p1829_p1), [#allocation6], 4294938624  ;;  %310 = vmatprep.mubr.f32.mxu1 %v1562_v0  ;;  %615 = vmatprep.mubr.f32.mxu0 %v1562_v0  ;;  %v520_v3 = vld [vmem:[#allocation5 + $0x308] sm:$0xff]  ;;  %v1095_v4 = vpack.c.bf16 %v217_v2, %v215_v1  ;;  %v522_v5 = vld [vmem:[#allocation5 + $0x318] sm:$0xff]  ;;  %s176_s17 = scalar_lea.vmem [#allocation7], %s1088_s15  ;;  %s1769_s4 = scalar_lea.hbm %s1815_s2, %s1094_s19 }
  0x58   : > { %v216_v7 = vld [vmem:[#allocation5 + $0x110] sm:$0xff]  ;;  %v1191_v8 = vpack.c.bf16 %v522_v5, %v520_v3  ;;  %v519_v10 = vld [vmem:[#allocation5 + $0x300] sm:$0xff]  ;;  %v219_v12 = vld [vmem:[#allocation5 + $0x128] sm:$0xff]  ;;  %s998_s27 = sshll.u32 %s176_s17, 4  ;;  %s985_s13 = scalar_lea.sflag [#allocation4], %s1720_s22  ;;  %s1764_s27 = int_to_ptr.vmem [resolvable:$true] %s998_s27 }
  0x59   : > { %v1097_v9 = vpack.c.bf16 %v216_v7, %v214_v6  ;;  %v521_v11 = vld [vmem:[#allocation5 + $0x310] sm:$0xff]  ;;  %1096 = vmatprep.subr.bf16.mxu1 %v1095_v4  ;;  %v221_v14 = vld [vmem:[#allocation5 + $0x138] sm:$0xff]  ;;  %v524_v15 = vld [vmem:[#allocation5 + $0x328] sm:$0xff]  ;;  %s1484_s5 = scalar_lea.vmem %s1764_s27, 512  ;;  %s1563_s6 = smov [#allocation7]  }
  0x5a   : > { %v1193_v13 = vpack.c.bf16 %v521_v11, %v519_v10  ;;  %v526_v16 = vld [vmem:[#allocation5 + $0x338] sm:$0xff]  ;;  %1192 = vmatprep.subr.bf16.mxu0 %v1191_v8  ;;  %v1099_v17 = vpack.c.bf16 %v221_v14, %v219_v12  ;;  %v218_v19 = vld [vmem:[#allocation5 + $0x120] sm:$0xff]  ;;  %v220_v20 = vld [vmem:[#allocation5 + $0x130] sm:$0xff]  ;;  %p1485_p4 = scmp.ne.s32.totalorder %s1764_s27, %s1484_s5  ;;  %s1488_s7 = sshll.u32 %s1563_s6, 4  ;;  %s1489_s7 = int_to_ptr.vmem [resolvable:$false] %s1488_s7 }
  0x5b   : > { %1098 = vmatpush1.bf16.msra.mxu1 %v1097_v9  ;;  %v1195_v18 = vpack.c.bf16 %v526_v16, %v524_v15  ;;  %v523_v21 = vld [vmem:[#allocation5 + $0x320] sm:$0xff]  ;;  %v1101_v22 = vpack.c.bf16 %v220_v20, %v218_v19  ;;  %v525_v23 = vld [vmem:[#allocation5 + $0x330] sm:$0xff]  ;;  %v223_v24 = vld [vmem:[#allocation5 + $0x148] sm:$0xff]  ;;  %s1490_s18 = scalar_lea.vmem %s1489_s7, 1024  ;;  %p1491_p10 = scmp.lt.s32.totalorder %s1764_s27, %s1489_s7 }
  0x5c   : > { %1194 = vmatpush1.bf16.msra.mxu0 %v1193_v13  ;;  %v225_v25 = vld [vmem:[#allocation5 + $0x158] sm:$0xff]  ;;  %1100 = vmatprep.subr.bf16.mxu1 %v1099_v17  ;;  %v1197_v26 = vpack.c.bf16 %v525_v23, %v523_v21  ;;  %v528_v28 = vld [vmem:[#allocation5 + $0x348] sm:$0xff]  ;;  %v222_v30 = vld [vmem:[#allocation5 + $0x140] sm:$0xff]  ;;  %p1486_p6 = pnand %p1485_p4, %p1672_p12  ;;  %p1492_p13 = scmp.lt.s32.totalorder %s1490_s18, %s1484_s5 }
  0x5d   : > { %1196 = vmatprep.subr.bf16.mxu0 %v1195_v18  ;;  %v1103_v27 = vpack.c.bf16 %v225_v25, %v223_v24  ;;  %v530_v29 = vld [vmem:[#allocation5 + $0x358] sm:$0xff]  ;;  %v224_v32 = vld [vmem:[#allocation5 + $0x150] sm:$0xff]  ;;  %v527_v33 = vld [vmem:[#allocation5 + $0x340] sm:$0xff] }
  0x5e   : > { %v1199_v31 = vpack.c.bf16 %v530_v29, %v528_v28  ;;  %v529_v34 = vld [vmem:[#allocation5 + $0x350] sm:$0xff]  ;;  %v1105_v35 = vpack.c.bf16 %v224_v32, %v222_v30  ;;  %v227_v36 = vld [vmem:[#allocation5 + $0x168] sm:$0xff]  ;;  %v229_v37 = vld [vmem:[#allocation5 + $0x178] sm:$0xff]  ;;  %p1487_p8 = pneg %p1486_p6  ;;  %p1493_p3 = por %p1492_p13, %p1491_p10 }
  0x5f   : > { %1102 = vmatpush1.bf16.msra.mxu1 %v1101_v22  ;;  %v532_v38 = vld [vmem:[#allocation5 + $0x368] sm:$0xff]  ;;  %v1201_v39 = vpack.c.bf16 %v529_v34, %v527_v33  ;;  %v1107_v40 = vpack.c.bf16 %v229_v37, %v227_v36  ;;  %v534_v41 = vld [vmem:[#allocation5 + $0x378] sm:$0xff]  ;;  %v226_v42 = vld [vmem:[#allocation5 + $0x160] sm:$0xff] }
  0x60   : > { %1198 = vmatpush1.bf16.msra.mxu0 %v1197_v26  ;;  %1104 = vmatprep.subr.bf16.mxu1 %v1103_v27  ;;  %v228_v43 = vld [vmem:[#allocation5 + $0x170] sm:$0xff]  ;;  %v1203_v44 = vpack.c.bf16 %v534_v41, %v532_v38  ;;  %v531_v45 = vld [vmem:[#allocation5 + $0x360] sm:$0xff]  ;;  %v231_v47 = vld [vmem:[#allocation5 + $0x188] sm:$0xff]  ;;  %p1494_p7 = pnand %p1493_p3, %p1487_p8 }
  0x61   : > { %1200 = vmatprep.subr.bf16.mxu0 %v1199_v31  ;;  %v533_v46 = vld [vmem:[#allocation5 + $0x370] sm:$0xff]  ;;  %v233_v48 = vld [vmem:[#allocation5 + $0x198] sm:$0xff]  ;;  %v536_v49 = vld [vmem:[#allocation5 + $0x388] sm:$0xff]  ;;  %v1109_v51 = vpack.c.bf16 %v228_v43, %v226_v42 }
  0x62   : > { %v538_v50 = vld [vmem:[#allocation5 + $0x398] sm:$0xff]  ;;  %v1205_v52 = vpack.c.bf16 %v533_v46, %v531_v45  ;;  %v1111_v53 = vpack.c.bf16 %v233_v48, %v231_v47  ;;  %v230_v54 = vld [vmem:[#allocation5 + $0x180] sm:$0xff]  ;;  %v232_v55 = vld [vmem:[#allocation5 + $0x190] sm:$0xff] }
  0x63   : > { %1106 = vmatpush1.bf16.msra.mxu1 %v1105_v35  ;;  %v535_v56 = vld [vmem:[#allocation5 + $0x380] sm:$0xff]  ;;  %v1207_v57 = vpack.c.bf16 %v538_v50, %v536_v49  ;;  %v537_v58 = vld [vmem:[#allocation5 + $0x390] sm:$0xff]  ;;  %v235_v59 = vld [vmem:[#allocation5 + $0x1a8] sm:$0xff]  ;;  %v1113_v63 = vpack.c.bf16 %v232_v55, %v230_v54 }
  0x64   : > { %1202 = vmatpush1.bf16.msra.mxu0 %v1201_v39  ;;  %1108 = vmatprep.subr.bf16.mxu1 %v1107_v40  ;;  %v237_v60 = vld [vmem:[#allocation5 + $0x1b8] sm:$0xff]  ;;  %v540_v61 = vld [vmem:[#allocation5 + $0x3a8] sm:$0xff]  ;;  %v1209_v1 = vpack.c.bf16 %v537_v58, %v535_v56  ;;  %v234_v3 = vld [vmem:[#allocation5 + $0x1a0] sm:$0xff] }
  0x65   : > { %1204 = vmatprep.subr.bf16.mxu0 %v1203_v44  ;;  %v542_v62 = vld [vmem:[#allocation5 + $0x3b8] sm:$0xff]  ;;  %v1115_v2 = vpack.c.bf16 %v237_v60, %v235_v59  ;;  %v236_v4 = vld [vmem:[#allocation5 + $0x1b0] sm:$0xff]  ;;  %v539_v5 = vld [vmem:[#allocation5 + $0x3a0] sm:$0xff] }
  0x66   : > { %v1211_v6 = vpack.c.bf16 %v542_v62, %v540_v61  ;;  %v541_v7 = vld [vmem:[#allocation5 + $0x3b0] sm:$0xff]  ;;  %v239_v8 = vld [vmem:[#allocation5 + $0x1c8] sm:$0xff]  ;;  %v241_v9 = vld [vmem:[#allocation5 + $0x1d8] sm:$0xff]  ;;  %v1117_v12 = vpack.c.bf16 %v236_v4, %v234_v3 }
  0x67   : > { %1110 = vmatpush1.bf16.msra.mxu1 %v1109_v51  ;;  %v544_v10 = vld [vmem:[#allocation5 + $0x3c8] sm:$0xff]  ;;  %v546_v11 = vld [vmem:[#allocation5 + $0x3d8] sm:$0xff]  ;;  %v1213_v13 = vpack.c.bf16 %v541_v7, %v539_v5  ;;  %v1119_v14 = vpack.c.bf16 %v241_v9, %v239_v8  ;;  %v238_v15 = vld [vmem:[#allocation5 + $0x1c0] sm:$0xff] }
  0x68   : > { %1206 = vmatpush1.bf16.msra.mxu0 %v1205_v52  ;;  %1112 = vmatprep.subr.bf16.mxu1 %v1111_v53  ;;  %v240_v16 = vld [vmem:[#allocation5 + $0x1d0] sm:$0xff]  ;;  %v543_v17 = vld [vmem:[#allocation5 + $0x3c0] sm:$0xff]  ;;  %v1215_v18 = vpack.c.bf16 %v546_v11, %v544_v10  ;;  %v243_v20 = vld [vmem:[#allocation5 + $0x1e8] sm:$0xff] }
  0x69   : > { %1208 = vmatprep.subr.bf16.mxu0 %v1207_v57  ;;  %v545_v19 = vld [vmem:[#allocation5 + $0x3d0] sm:$0xff]  ;;  %v245_v21 = vld [vmem:[#allocation5 + $0x1f8] sm:$0xff]  ;;  %v548_v22 = vld [vmem:[#allocation5 + $0x3e8] sm:$0xff]  ;;  %v1121_v24 = vpack.c.bf16 %v240_v16, %v238_v15 }
  0x6a   : > { %v550_v23 = vld [vmem:[#allocation5 + $0x3f8] sm:$0xff]  ;;  %v1217_v25 = vpack.c.bf16 %v545_v19, %v543_v17  ;;  %v1123_v26 = vpack.c.bf16 %v245_v21, %v243_v20  ;;  %v242_v27 = vld [vmem:[#allocation5 + $0x1e0] sm:$0xff]  ;;  %v244_v28 = vld [vmem:[#allocation5 + $0x1f0] sm:$0xff] }
  0x6b   : > { %1114 = vmatpush1.bf16.msra.mxu1 %v1113_v63  ;;  %v547_v29 = vld [vmem:[#allocation5 + $0x3e0] sm:$0xff]  ;;  %v1219_v30 = vpack.c.bf16 %v550_v23, %v548_v22  ;;  %v549_v31 = vld [vmem:[#allocation5 + $0x3f0] sm:$0xff]  ;;  %v180_v32 = vld [vmem:[#allocation5 + $0x8] sm:$0xff]  ;;  %v1125_v36 = vpack.c.bf16 %v244_v28, %v242_v27 }
  0x6c   : > { %1210 = vmatpush1.bf16.msra.mxu0 %v1209_v1  ;;  %1116 = vmatprep.subr.bf16.mxu1 %v1115_v2  ;;  %v182_v33 = vld [vmem:[#allocation5 + $0x18] sm:$0xff]  ;;  %v636_v34 = vld [vmem:[#allocation5 + $0x408] sm:$0xff]  ;;  %v1221_v37 = vpack.c.bf16 %v549_v31, %v547_v29  ;;  %v179_v39 = vld [vmem:[#allocation5] sm:$0xff] }
  0x6d   : > { %1212 = vmatprep.subr.bf16.mxu0 %v1211_v6  ;;  %v638_v35 = vld [vmem:[#allocation5 + $0x418] sm:$0xff]  ;;  %v1127_v38 = vpack.c.bf16 %v182_v33, %v180_v32  ;;  %v181_v40 = vld [vmem:[#allocation5 + $0x10] sm:$0xff]  ;;  %v635_v41 = vld [vmem:[#allocation5 + $0x400] sm:$0xff] }
  0x6e   : > { %v1223_v42 = vpack.c.bf16 %v638_v35, %v636_v34  ;;  %v637_v43 = vld [vmem:[#allocation5 + $0x410] sm:$0xff]  ;;  %v184_v44 = vld [vmem:[#allocation5 + $0x28] sm:$0xff]  ;;  %v186_v45 = vld [vmem:[#allocation5 + $0x38] sm:$0xff]  ;;  %v1129_v49 = vpack.c.bf16 %v181_v40, %v179_v39 }
  0x6f   : > { %1118 = vmatpush1.bf16.msra.mxu1 %v1117_v12  ;;  %v640_v46 = vld [vmem:[#allocation5 + $0x428] sm:$0xff]  ;;  %v642_v47 = vld [vmem:[#allocation5 + $0x438] sm:$0xff]  ;;  %v1225_v51 = vpack.c.bf16 %v637_v43, %v635_v41  ;;  %v1131_v52 = vpack.c.bf16 %v186_v45, %v184_v44  ;;  %v183_v53 = vld [vmem:[#allocation5 + $0x20] sm:$0xff] }
  0x70   : > { %1214 = vmatpush1.bf16.msra.mxu0 %v1213_v13  ;;  %1120 = vmatprep.subr.bf16.mxu1 %v1119_v14  ;;  %v211_v48 = vld [vmem:[%s1724_s3 + $0x1] sm:$0xff]  ;;  %v639_v55 = vld [vmem:[#allocation5 + $0x420] sm:$0xff]  ;;  %v1227_v56 = vpack.c.bf16 %v642_v47, %v640_v46 }
  0x71   : > { %1216 = vmatprep.subr.bf16.mxu0 %v1215_v18  ;;  %v516_v50 = vld [vmem:[%s1724_s3 + $0x3] sm:$0xff]  ;;  %v187_v2 = vld [vmem:[#allocation5 + $0x40] sm:$0xff] }
  0x72   : > { %v185_v54 = vld [vmem:[#allocation5 + $0x30] sm:$0xff]  ;;  %v188_v58 = vld [vmem:[#allocation5 + $0x48] sm:$0xff]  ;;  %v190_v59 = vld [vmem:[#allocation5 + $0x58] sm:$0xff] }
  0x73   : > { %1122 = vmatpush1.bf16.msra.mxu1 %v1121_v24  ;;  %v641_v57 = vld [vmem:[#allocation5 + $0x430] sm:$0xff]  ;;  %v644_v60 = vld [vmem:[#allocation5 + $0x448] sm:$0xff]  ;;  %v646_v61 = vld [vmem:[#allocation5 + $0x458] sm:$0xff]  ;;  %v1133_v62 = vpack.c.bf16 %v185_v54, %v183_v53  ;;  %v1135_v1 = vpack.c.bf16 %v190_v59, %v188_v58 }
  0x74   : > { %1218 = vmatpush1.bf16.msra.mxu0 %v1217_v25  ;;  %1124 = vmatprep.subr.bf16.mxu1 %v1123_v26  ;;  %v1229_v63 = vpack.c.bf16 %v641_v57, %v639_v55  ;;  %v189_v3 = vld [vmem:[#allocation5 + $0x50] sm:$0xff]  ;;  %v643_v4 = vld [vmem:[#allocation5 + $0x440] sm:$0xff]  ;;  %v1231_v5 = vpack.c.bf16 %v646_v61, %v644_v60  ;;  %v192_v7 = vld [vmem:[#allocation5 + $0x68] sm:$0xff] }
  0x75   : > { %1220 = vmatprep.subr.bf16.mxu0 %v1219_v30  ;;  %v645_v6 = vld [vmem:[#allocation5 + $0x450] sm:$0xff]  ;;  %v194_v8 = vld [vmem:[#allocation5 + $0x78] sm:$0xff]  ;;  %v648_v9 = vld [vmem:[#allocation5 + $0x468] sm:$0xff]  ;;  %v1137_v11 = vpack.c.bf16 %v189_v3, %v187_v2 }
  0x76   : > { %v650_v10 = vld [vmem:[#allocation5 + $0x478] sm:$0xff]  ;;  %v191_v12 = vld [vmem:[#allocation5 + $0x60] sm:$0xff]  ;;  %v1233_v13 = vpack.c.bf16 %v645_v6, %v643_v4  ;;  %v1139_v14 = vpack.c.bf16 %v194_v8, %v192_v7  ;;  %v193_v15 = vld [vmem:[#allocation5 + $0x70] sm:$0xff] }
  0x77   : > { %1126 = vmatpush1.bf16.msra.mxu1 %v1125_v36  ;;  %v647_v16 = vld [vmem:[#allocation5 + $0x460] sm:$0xff]  ;;  %v649_v17 = vld [vmem:[#allocation5 + $0x470] sm:$0xff]  ;;  %v1235_v18 = vpack.c.bf16 %v650_v10, %v648_v9  ;;  %v196_v19 = vld [vmem:[#allocation5 + $0x88] sm:$0xff]  ;;  %v1141_v25 = vpack.c.bf16 %v193_v15, %v191_v12 }
  0x78   : > { %1222 = vmatpush1.bf16.msra.mxu0 %v1221_v37  ;;  %1128 = vmatprep.subr.bf16.mxu1 %v1127_v38  ;;  %v198_v20 = vld [vmem:[#allocation5 + $0x98] sm:$0xff]  ;;  %v652_v22 = vld [vmem:[#allocation5 + $0x488] sm:$0xff]  ;;  %v1237_v26 = vpack.c.bf16 %v649_v17, %v647_v16  ;;  %v195_v28 = vld [vmem:[#allocation5 + $0x80] sm:$0xff] }
  0x79   : > { %1224 = vmatprep.subr.bf16.mxu0 %v1223_v42  ;;  %v212_v21 = vld [vmem:[%s1724_s3 + $0x9] sm:$0xff]  ;;  %v1143_v27 = vpack.c.bf16 %v198_v20, %v196_v19  ;;  %v200_v33 = vld [vmem:[#allocation5 + $0xa8] sm:$0xff] }
  0x7a   : > { %311 = vmatmul.mubr.f32.vlgmr.msra.gmra.mrb[0].mxu1 %v211_v48  ;;  %v654_v23 = vld [vmem:[#allocation5 + $0x498] sm:$0xff]  ;;  %v197_v29 = vld [vmem:[#allocation5 + $0x90] sm:$0xff]  ;;  %v651_v30 = vld [vmem:[#allocation5 + $0x480] sm:$0xff] }
  0x7b   : > { %1130 = vmatpush1.bf16.msra.mxu1 %v1129_v49  ;;  %616 = vmatmul.mubr.f32.vlgmr.msra.gmra.mrb[0].mxu0 %v516_v50  ;;  %v517_v24 = vld [vmem:[%s1724_s3 + $0xb] sm:$0xff]  ;;  %v1239_v31 = vpack.c.bf16 %v654_v23, %v652_v22  ;;  %v656_v35 = vld [vmem:[#allocation5 + $0x4a8] sm:$0xff]  ;;  %v1145_v37 = vpack.c.bf16 %v197_v29, %v195_v28 }
  0x7c   : > { %1226 = vmatpush1.bf16.msra.mxu0 %v1225_v51  ;;  %1132 = vmatprep.subr.bf16.mxu1 %v1131_v52  ;;  %v653_v32 = vld [vmem:[#allocation5 + $0x490] sm:$0xff]  ;;  %v202_v34 = vld [vmem:[#allocation5 + $0xb8] sm:$0xff]  ;;  %v199_v40 = vld [vmem:[#allocation5 + $0xa0] sm:$0xff] }
  0x7d   : > { %1228 = vmatprep.subr.bf16.mxu0 %v1227_v56  ;;  %316 = vmatprep.mubr.f32.mxu1 %v1562_v0  ;;  %v658_v36 = vld [vmem:[#allocation5 + $0x4b8] sm:$0xff]  ;;  %v1241_v38 = vpack.c.bf16 %v653_v32, %v651_v30  ;;  %v1147_v39 = vpack.c.bf16 %v202_v34, %v200_v33  ;;  %v201_v41 = vld [vmem:[#allocation5 + $0xb0] sm:$0xff]  ;;  %v655_v42 = vld [vmem:[#allocation5 + $0x4a0] sm:$0xff] }
  0x7e   : > { %621 = vmatprep.mubr.f32.mxu0 %v1562_v0  ;;  %317 = vmatmul.mubr.f32.gmra.mrb[2].mxu1 %v212_v21  ;;  %v1243_v43 = vpack.c.bf16 %v658_v36, %v656_v35  ;;  %v657_v44 = vld [vmem:[#allocation5 + $0x4b0] sm:$0xff]  ;;  %v204_v45 = vld [vmem:[#allocation5 + $0xc8] sm:$0xff]  ;;  %v206_v46 = vld [vmem:[#allocation5 + $0xd8] sm:$0xff]  ;;  %v1149_v49 = vpack.c.bf16 %v201_v41, %v199_v40 }
  0x7f   : > { %1134 = vmatpush1.bf16.msra.mxu1 %v1133_v62  ;;  %622 = vmatmul.mubr.f32.gmra.mrb[2].mxu0 %v517_v24  ;;  %v660_v47 = vld [vmem:[#allocation5 + $0x4c8] sm:$0xff]  ;;  %v662_v48 = vld [vmem:[#allocation5 + $0x4d8] sm:$0xff]  ;;  %v1245_v50 = vpack.c.bf16 %v657_v44, %v655_v42  ;;  %v1151_v51 = vpack.c.bf16 %v206_v46, %v204_v45  ;;  %v203_v52 = vld [vmem:[#allocation5 + $0xc0] sm:$0xff] }
  0x80   : > { %1230 = vmatpush1.bf16.msra.mxu0 %v1229_v63  ;;  %1136 = vmatprep.subr.bf16.mxu1 %v1135_v1  ;;  %v205_v53 = vld [vmem:[#allocation5 + $0xd0] sm:$0xff]  ;;  %v659_v54 = vld [vmem:[#allocation5 + $0x4c0] sm:$0xff]  ;;  %v1247_v55 = vpack.c.bf16 %v662_v48, %v660_v47  ;;  %v208_v57 = vld [vmem:[#allocation5 + $0xe8] sm:$0xff] }
  0x81   : > { %1232 = vmatprep.subr.bf16.mxu0 %v1231_v5  ;;  %387 = vmatprep.mubr.f32.mxu1 %v1562_v0  ;;  %v661_v56 = vld [vmem:[#allocation5 + $0x4d0] sm:$0xff]  ;;  %v210_v58 = vld [vmem:[#allocation5 + $0xf8] sm:$0xff]  ;;  %v664_v59 = vld [vmem:[#allocation5 + $0x4e8] sm:$0xff]  ;;  %v1153_v61 = vpack.c.bf16 %v205_v53, %v203_v52 }
  0x82   : > { %731 = vmatprep.mubr.f32.mxu0 %v1562_v0  ;;  %v666_v60 = vld [vmem:[#allocation5 + $0x4f8] sm:$0xff]  ;;  %v1249_v62 = vpack.c.bf16 %v661_v56, %v659_v54  ;;  %v1155_v63 = vpack.c.bf16 %v210_v58, %v208_v57  ;;  %v207_v1 = vld [vmem:[#allocation5 + $0xe0] sm:$0xff]  ;;  %v209_v2 = vld [vmem:[#allocation5 + $0xf0] sm:$0xff] }
  0x83   : > { %1138 = vmatpush1.bf16.msra.mxu1 %v1137_v11  ;;  %v663_v3 = vld [vmem:[#allocation5 + $0x4e0] sm:$0xff]  ;;  %v1251_v4 = vpack.c.bf16 %v666_v60, %v664_v59  ;;  %v665_v5 = vld [vmem:[#allocation5 + $0x4f0] sm:$0xff]  ;;  %v404_v6 = vld [vmem:[#allocation5 + $0x208] sm:$0xff]  ;;  %v1157_v10 = vpack.c.bf16 %v209_v2, %v207_v1 }
  0x84   : > { %1234 = vmatpush1.bf16.msra.mxu0 %v1233_v13  ;;  %1140 = vmatprep.subr.bf16.mxu1 %v1139_v14  ;;  %v406_v7 = vld [vmem:[#allocation5 + $0x218] sm:$0xff]  ;;  %v752_v8 = vld [vmem:[#allocation5 + $0x508] sm:$0xff]  ;;  %v1253_v11 = vpack.c.bf16 %v665_v5, %v663_v3  ;;  %v403_v13 = vld [vmem:[#allocation5 + $0x200] sm:$0xff] }
  0x85   : > { %1236 = vmatprep.subr.bf16.mxu0 %v1235_v18  ;;  %v754_v9 = vld [vmem:[#allocation5 + $0x518] sm:$0xff]  ;;  %v1159_v12 = vpack.c.bf16 %v406_v7, %v404_v6  ;;  %v405_v14 = vld [vmem:[#allocation5 + $0x210] sm:$0xff]  ;;  %v751_v15 = vld [vmem:[#allocation5 + $0x500] sm:$0xff] }
  0x86   : > { %v1255_v16 = vpack.c.bf16 %v754_v9, %v752_v8  ;;  %v753_v17 = vld [vmem:[#allocation5 + $0x510] sm:$0xff]  ;;  %v408_v18 = vld [vmem:[#allocation5 + $0x228] sm:$0xff]  ;;  %v410_v19 = vld [vmem:[#allocation5 + $0x238] sm:$0xff]  ;;  %v1161_v23 = vpack.c.bf16 %v405_v14, %v403_v13 }
  0x87   : > { %1142 = vmatpush1.bf16.msra.mxu1 %v1141_v25  ;;  %v756_v20 = vld [vmem:[#allocation5 + $0x528] sm:$0xff]  ;;  %v758_v21 = vld [vmem:[#allocation5 + $0x538] sm:$0xff]  ;;  %v1257_v25 = vpack.c.bf16 %v753_v17, %v751_v15  ;;  %v409_v28 = vld [vmem:[#allocation5 + $0x230] sm:$0xff] }
  0x88   : > { %1238 = vmatpush1.bf16.msra.mxu0 %v1237_v26  ;;  %1144 = vmatprep.subr.bf16.mxu1 %v1143_v27  ;;  %v177_v22 = vld [vmem:[%s1724_s3] sm:$0xff]  ;;  %v1163_v26 = vpack.c.bf16 %v410_v19, %v408_v18  ;;  %v407_v27 = vld [vmem:[#allocation5 + $0x220] sm:$0xff]  ;;  %v1259_v30 = vpack.c.bf16 %v758_v21, %v756_v20  ;;  %v414_v33 = vld [vmem:[#allocation5 + $0x258] sm:$0xff] }
  0x89   : > { %1240 = vmatprep.subr.bf16.mxu0 %v1239_v31  ;;  %v632_v24 = vld [vmem:[%s1724_s3 + $0x4] sm:$0xff]  ;;  %v755_v29 = vld [vmem:[#allocation5 + $0x520] sm:$0xff]  ;;  %v1165_v36 = vpack.c.bf16 %v409_v28, %v407_v27 }
  0x8a   : > { %v757_v31 = vld [vmem:[#allocation5 + $0x530] sm:$0xff]  ;;  %v412_v32 = vld [vmem:[#allocation5 + $0x248] sm:$0xff]  ;;  %v762_v35 = vld [vmem:[#allocation5 + $0x558] sm:$0xff] }
  0x8b   : > { %1146 = vmatpush1.bf16.msra.mxu1 %v1145_v37  ;;  %v760_v34 = vld [vmem:[#allocation5 + $0x548] sm:$0xff]  ;;  %v411_v37 = vld [vmem:[#allocation5 + $0x240] sm:$0xff]  ;;  %v1167_v40 = vpack.c.bf16 %v414_v33, %v412_v32  ;;  %v413_v41 = vld [vmem:[#allocation5 + $0x250] sm:$0xff] }
  0x8c   : > { %1242 = vmatpush1.bf16.msra.mxu0 %v1241_v38  ;;  %1148 = vmatprep.subr.bf16.mxu1 %v1147_v39  ;;  %v178_v38 = vld [vmem:[%s1724_s3 + $0x8] sm:$0xff]  ;;  %v1261_v39 = vpack.c.bf16 %v757_v31, %v755_v29  ;;  %v759_v42 = vld [vmem:[#allocation5 + $0x540] sm:$0xff]  ;;  %v1263_v44 = vpack.c.bf16 %v762_v35, %v760_v34  ;;  %v416_v46 = vld [vmem:[#allocation5 + $0x268] sm:$0xff] }
  0x8d   : > { %1244 = vmatprep.subr.bf16.mxu0 %v1243_v43  ;;  %v633_v43 = vld [vmem:[%s1724_s3 + $0xc] sm:$0xff]  ;;  %v764_v48 = vld [vmem:[#allocation5 + $0x568] sm:$0xff] }
  0x8e   : > { %v761_v45 = vld [vmem:[#allocation5 + $0x550] sm:$0xff]  ;;  %v418_v47 = vld [vmem:[#allocation5 + $0x278] sm:$0xff]  ;;  %v415_v53 = vld [vmem:[#allocation5 + $0x260] sm:$0xff] }
  0x8f   : > { %1150 = vmatpush1.bf16.msra.mxu1 %v1149_v49  ;;  %v766_v49 = vld [vmem:[#allocation5 + $0x578] sm:$0xff]  ;;  %v1171_v52 = vpack.c.bf16 %v418_v47, %v416_v46  ;;  %v417_v54 = vld [vmem:[#allocation5 + $0x270] sm:$0xff]  ;;  %v420_v58 = vld [vmem:[#allocation5 + $0x288] sm:$0xff] }
  0x90   : > { %1246 = vmatpush1.bf16.msra.mxu0 %v1245_v50  ;;  %1152 = vmatprep.subr.bf16.mxu1 %v1151_v51  ;;  %v1169_v50 = vpack.c.bf16 %v413_v41, %v411_v37  ;;  %v1265_v51 = vpack.c.bf16 %v761_v45, %v759_v42  ;;  %v1267_v56 = vpack.c.bf16 %v766_v49, %v764_v48  ;;  %v765_v57 = vld [vmem:[#allocation5 + $0x570] sm:$0xff]  ;;  %v422_v59 = vld [vmem:[#allocation5 + $0x298] sm:$0xff]  ;;  %v768_v60 = vld [vmem:[#allocation5 + $0x588] sm:$0xff] }
  0x91   : > { %1248 = vmatprep.subr.bf16.mxu0 %v1247_v55  ;;  %v763_v55 = vld [vmem:[#allocation5 + $0x560] sm:$0xff]  ;;  %v1175_v1 = vpack.c.bf16 %v422_v59, %v420_v58  ;;  %v421_v3 = vld [vmem:[#allocation5 + $0x290] sm:$0xff]  ;;  %v424_v7 = vld [vmem:[#allocation5 + $0x2a8] sm:$0xff] }
  0x92   : > { %v419_v2 = vld [vmem:[#allocation5 + $0x280] sm:$0xff]  ;;  %v769_v6 = vld [vmem:[#allocation5 + $0x590] sm:$0xff]  ;;  %v426_v8 = vld [vmem:[#allocation5 + $0x2b8] sm:$0xff] }
  0x93   : > { %1154 = vmatpush1.bf16.msra.mxu1 %v1153_v61  ;;  %v770_v61 = vld [vmem:[#allocation5 + $0x598] sm:$0xff]  ;;  %v772_v9 = vld [vmem:[#allocation5 + $0x5a8] sm:$0xff]  ;;  %v1179_v13 = vpack.c.bf16 %v426_v8, %v424_v7  ;;  %v423_v14 = vld [vmem:[#allocation5 + $0x2a0] sm:$0xff] }
  0x94   : > { %1250 = vmatpush1.bf16.msra.mxu0 %v1249_v62  ;;  %1156 = vmatprep.subr.bf16.mxu1 %v1155_v63  ;;  %v1173_v62 = vpack.c.bf16 %v417_v54, %v415_v53  ;;  %v1269_v63 = vpack.c.bf16 %v765_v57, %v763_v55  ;;  %v1271_v5 = vpack.c.bf16 %v770_v61, %v768_v60  ;;  %v425_v15 = vld [vmem:[#allocation5 + $0x2b0] sm:$0xff]  ;;  %v428_v19 = vld [vmem:[#allocation5 + $0x2c8] sm:$0xff]  ;;  %v430_v20 = vld [vmem:[#allocation5 + $0x2d8] sm:$0xff] }
  0x95   : > { %1252 = vmatprep.subr.bf16.mxu0 %v1251_v4  ;;  %v767_v4 = vld [vmem:[#allocation5 + $0x580] sm:$0xff]  ;;  %v773_v18 = vld [vmem:[#allocation5 + $0x5b0] sm:$0xff]  ;;  %v776_v21 = vld [vmem:[#allocation5 + $0x5c8] sm:$0xff] }
  0x96   : > { %v429_v27 = vld [vmem:[#allocation5 + $0x2d0] sm:$0xff]  ;;  %v775_v28 = vld [vmem:[#allocation5 + $0x5c0] sm:$0xff]  ;;  %v432_v31 = vld [vmem:[#allocation5 + $0x2e8] sm:$0xff] }
  0x97   : > { %1158 = vmatpush1.bf16.msra.mxu1 %v1157_v10  ;;  %v774_v10 = vld [vmem:[#allocation5 + $0x5b8] sm:$0xff]  ;;  %v780_v33 = vld [vmem:[#allocation5 + $0x5e8] sm:$0xff]  ;;  %v781_v42 = vld [vmem:[#allocation5 + $0x5f0] sm:$0xff] }
  0x98   : > { %1254 = vmatpush1.bf16.msra.mxu0 %v1253_v11  ;;  %1160 = vmatprep.subr.bf16.mxu1 %v1159_v12  ;;  %v1177_v11 = vpack.c.bf16 %v421_v3, %v419_v2  ;;  %v1273_v12 = vpack.c.bf16 %v769_v6, %v767_v4  ;;  %v1275_v17 = vpack.c.bf16 %v774_v10, %v772_v9  ;;  %v434_v32 = vld [vmem:[#allocation5 + $0x2f8] sm:$0xff]  ;;  %v867_v48 = vld [vmem:[#allocation5 + $0x600] sm:$0xff]  ;;  %v869_v49 = vld [vmem:[#allocation5 + $0x610] sm:$0xff] }
  0x99   : > { %1256 = vmatprep.subr.bf16.mxu0 %v1255_v16  ;;  %v771_v16 = vld [vmem:[#allocation5 + $0x5a0] sm:$0xff]  ;;  %v782_v34 = vld [vmem:[#allocation5 + $0x5f8] sm:$0xff]  ;;  %v1187_v37 = vpack.c.bf16 %v434_v32, %v432_v31  ;;  %v1289_v53 = vpack.c.bf16 %v869_v49, %v867_v48  ;;  %v876_v58 = vld [vmem:[#allocation5 + $0x648] sm:$0xff] }
  0x9a   : > { %388 = vmatmul.mubr.f32.vlgmr.msra.gmra.mrb[0].mxu1 %v177_v22  ;;  %v778_v22 = vld [vmem:[#allocation5 + $0x5d8] sm:$0xff]  ;;  %v1283_v41 = vpack.c.bf16 %v782_v34, %v780_v33  ;;  %v871_v55 = vld [vmem:[#allocation5 + $0x620] sm:$0xff]  ;;  %v877_v2 = vld [vmem:[#allocation5 + $0x650] sm:$0xff] }
  0x9b   : > { %1162 = vmatpush1.bf16.msra.mxu1 %v1161_v23  ;;  %732 = vmatmul.mubr.f32.vlgmr.msra.gmra.mrb[0].mxu0 %v632_v24  ;;  %v1181_v23 = vpack.c.bf16 %v425_v15, %v423_v14  ;;  %v1277_v24 = vpack.c.bf16 %v773_v18, %v771_v16  ;;  %v1279_v29 = vpack.c.bf16 %v778_v22, %v776_v21  ;;  %v748_v54 = vld [vmem:[%s1724_s3 + $0x5] sm:$0xff]  ;;  %v879_v7 = vld [vmem:[#allocation5 + $0x660] sm:$0xff] }
  0x9c   : > { %1258 = vmatpush1.bf16.msra.mxu0 %v1257_v25  ;;  %1164 = vmatprep.subr.bf16.mxu1 %v1163_v26  ;;  %v1183_v25 = vpack.c.bf16 %v430_v20, %v428_v19  ;;  %v427_v26 = vld [vmem:[#allocation5 + $0x2c0] sm:$0xff]  ;;  %v878_v59 = vld [vmem:[#allocation5 + $0x658] sm:$0xff]  ;;  %v880_v3 = vld [vmem:[#allocation5 + $0x668] sm:$0xff] }
  0x9d   : > { %1260 = vmatprep.subr.bf16.mxu0 %v1259_v30  ;;  %393 = vmatprep.mubr.f32.mxu1 %v1562_v0  ;;  %v777_v30 = vld [vmem:[#allocation5 + $0x5d0] sm:$0xff]  ;;  %v1185_v35 = vpack.c.bf16 %v429_v27, %v427_v26  ;;  %v882_v4 = vld [vmem:[#allocation5 + $0x678] sm:$0xff]  ;;  %v884_v9 = vld [vmem:[#allocation5 + $0x688] sm:$0xff] }
  0x9e   : > { %737 = vmatprep.mubr.f32.mxu0 %v1562_v0  ;;  %394 = vmatmul.mubr.f32.gmra.mrb[2].mxu1 %v178_v38  ;;  %v431_v38 = vld [vmem:[#allocation5 + $0x2e0] sm:$0xff]  ;;  %v1299_v6 = vpack.c.bf16 %v882_v4, %v880_v3  ;;  %v881_v8 = vld [vmem:[#allocation5 + $0x670] sm:$0xff]  ;;  %v886_v10 = vld [vmem:[#allocation5 + $0x698] sm:$0xff] }
  0x9f   : > { %1166 = vmatpush1.bf16.msra.mxu1 %v1165_v36  ;;  %738 = vmatmul.mubr.f32.gmra.mrb[2].mxu0 %v633_v43  ;;  %v1281_v36 = vpack.c.bf16 %v777_v30, %v775_v28  ;;  %v868_v43 = vld [vmem:[#allocation5 + $0x608] sm:$0xff]  ;;  %v401_v60 = vld [vmem:[%s1724_s3 + $0xa] sm:$0xff] }
  0xa0   : > { %1262 = vmatpush1.bf16.msra.mxu0 %v1261_v39  ;;  %1168 = vmatprep.subr.bf16.mxu1 %v1167_v40  ;;  %v433_v39 = vld [vmem:[#allocation5 + $0x2f0] sm:$0xff]  ;;  %v779_v40 = vld [vmem:[#allocation5 + $0x5e0] sm:$0xff]  ;;  %v888_v15 = vld [vmem:[#allocation5 + $0x6a8] sm:$0xff] }
  0xa1   : > { %1264 = vmatprep.subr.bf16.mxu0 %v1263_v44  ;;  %499 = vmatprep.mubr.f32.mxu1 %v1562_v0  ;;  %v870_v44 = vld [vmem:[#allocation5 + $0x618] sm:$0xff]  ;;  %v1189_v45 = vpack.c.bf16 %v433_v39, %v431_v38  ;;  %v1285_v46 = vpack.c.bf16 %v781_v42, %v779_v40  ;;  %v885_v14 = vld [vmem:[#allocation5 + $0x690] sm:$0xff]  ;;  %v887_v19 = vld [vmem:[#allocation5 + $0x6a0] sm:$0xff] }
  0xa2   : > { %847 = vmatprep.mubr.f32.mxu0 %v1562_v0  ;;  %v1287_v47 = vpack.c.bf16 %v870_v44, %v868_v43  ;;  %v890_v16 = vld [vmem:[#allocation5 + $0x6b8] sm:$0xff]  ;;  %v889_v20 = vld [vmem:[#allocation5 + $0x6b0] sm:$0xff]  ;;  %v892_v21 = vld [vmem:[#allocation5 + $0x6c8] sm:$0xff] }
  0xa3   : > { %1170 = vmatpush1.bf16.msra.mxu1 %v1169_v50  ;;  %v872_v50 = vld [vmem:[#allocation5 + $0x628] sm:$0xff]  ;;  %v1307_v18 = vpack.c.bf16 %v890_v16, %v888_v15  ;;  %v1309_v22 = vpack.c.bf16 %v889_v20, %v887_v19  ;;  %v898_v27 = vld [vmem:[#allocation5 + $0x6f8] sm:$0xff]  ;;  %v895_v30 = vld [vmem:[#allocation5 + $0x6e0] sm:$0xff] }
  0xa4   : > { %1266 = vmatpush1.bf16.msra.mxu0 %v1265_v51  ;;  %1172 = vmatprep.subr.bf16.mxu1 %v1171_v52  ;;  %v874_v51 = vld [vmem:[#allocation5 + $0x638] sm:$0xff]  ;;  %v896_v26 = vld [vmem:[#allocation5 + $0x6e8] sm:$0xff]  ;;  %v897_v31 = vld [vmem:[#allocation5 + $0x6f0] sm:$0xff] }
  0xa5   : > { %1268 = vmatprep.subr.bf16.mxu0 %v1267_v56  ;;  %v400_v52 = vld [vmem:[%s1724_s3 + $0x2] sm:$0xff]  ;;  %v1291_v57 = vpack.c.bf16 %v874_v51, %v872_v50  ;;  %v1317_v32 = vpack.c.bf16 %v897_v31, %v895_v30  ;;  %v865_v33 = vld [vmem:[%s1724_s3 + $0xe] sm:$0xff] }
  0xa6   : > { %v873_v56 = vld [vmem:[#allocation5 + $0x630] sm:$0xff] }
  0xa7   : > { %1174 = vmatpush1.bf16.msra.mxu1 %v1173_v62  ;;  %v1293_v61 = vpack.c.bf16 %v873_v56, %v871_v55  ;;  %v749_v62 = vld [vmem:[%s1724_s3 + $0xd] sm:$0xff] }
  0xa8   : > { %1270 = vmatpush1.bf16.msra.mxu0 %v1269_v63  ;;  %1176 = vmatprep.subr.bf16.mxu1 %v1175_v1  ;;  %v1295_v63 = vpack.c.bf16 %v878_v59, %v876_v58  ;;  %v875_v1 = vld [vmem:[#allocation5 + $0x640] sm:$0xff]  ;;  %v864_v34 = vld [vmem:[%s1724_s3 + $0x6] sm:$0xff] }
  0xa9   : > { %1272 = vmatprep.subr.bf16.mxu0 %v1271_v5  ;;  %v1297_v5 = vpack.c.bf16 %v877_v2, %v875_v1 }
  0xab   : > { %1178 = vmatpush1.bf16.msra.mxu1 %v1177_v11  ;;  %v1301_v11 = vpack.c.bf16 %v881_v8, %v879_v7 }
  0xac   : > { %1274 = vmatpush1.bf16.msra.mxu0 %v1273_v12  ;;  %1180 = vmatprep.subr.bf16.mxu1 %v1179_v13  ;;  %v1303_v12 = vpack.c.bf16 %v886_v10, %v884_v9  ;;  %v883_v13 = vld [vmem:[#allocation5 + $0x680] sm:$0xff] }
  0xad   : > { %1276 = vmatprep.subr.bf16.mxu0 %v1275_v17  ;;  %v1305_v17 = vpack.c.bf16 %v885_v14, %v883_v13 }
  0xaf   : > { %1182 = vmatpush1.bf16.msra.mxu1 %v1181_v23 }
  0xb0   : > { %1278 = vmatpush1.bf16.msra.mxu0 %v1277_v24  ;;  %1184 = vmatprep.subr.bf16.mxu1 %v1183_v25  ;;  %v891_v24 = vld [vmem:[#allocation5 + $0x6c0] sm:$0xff]  ;;  %v893_v25 = vld [vmem:[#allocation5 + $0x6d0] sm:$0xff] }
  0xb1   : > { %1280 = vmatprep.subr.bf16.mxu0 %v1279_v29  ;;  %v1313_v28 = vpack.c.bf16 %v893_v25, %v891_v24  ;;  %v1315_v29 = vpack.c.bf16 %v898_v27, %v896_v26 }
  0xb3   : > { %1186 = vmatpush1.bf16.msra.mxu1 %v1185_v35 }
  0xb4   : > { %1282 = vmatpush1.bf16.msra.mxu0 %v1281_v36  ;;  %1188 = vmatprep.subr.bf16.mxu1 %v1187_v37 }
  0xb5   : > { %1284 = vmatprep.subr.bf16.mxu0 %v1283_v41 }
  0xb7   : > { %1190 = vmatpush1.bf16.msra.mxu1 %v1189_v45 }
  0xb8   : > { %1286 = vmatpush1.bf16.msra.mxu0 %v1285_v46  ;;  %1319 = vmatprep.subr.bf16.mxu1 %v1287_v47 }
  0xb9   : > { %1288 = vmatprep.subr.bf16.mxu0 %v1287_v47 }
  0xba   : > { %500 = vmatmul.mubr.f32.vlgmr.msra.gmra.mrb[0].mxu1 %v400_v52 }
  0xbb   : > { %848 = vmatmul.mubr.f32.vlgmr.msra.gmra.mrb[0].mxu0 %v748_v54  ;;  %1327 = vmatpush1.bf16.msra.mxu1 %v1289_v53 }
  0xbc   : > { %1290 = vmatpush1.bf16.msra.mxu0 %v1289_v53  ;;  %505 = vmatprep.mubr.f32.mxu1 %v1562_v0 }
  0xbd   : > { %853 = vmatprep.mubr.f32.mxu0 %v1562_v0  ;;  %1292 = vmatprep.subr.bf16.mxu0 %v1291_v57 }
  0xbe   : > { %506 = vmatmul.mubr.f32.gmra.mrb[2].mxu1 %v401_v60  ;;  %1320 = vmatprep.subr.bf16.mxu1 %v1291_v57 }
  0xbf   : > { %854 = vmatmul.mubr.f32.gmra.mrb[2].mxu0 %v749_v62  ;;  %1328 = vmatpush1.bf16.msra.mxu1 %v1293_v61 }
  0xc0   : > { %1294 = vmatpush1.bf16.msra.mxu0 %v1293_v61  ;;  %1321 = vmatprep.subr.bf16.mxu1 %v1295_v63 }
  0xc1   : > { %1296 = vmatprep.subr.bf16.mxu0 %v1295_v63  ;;  %963 = vmatprep.mubr.f32.mxu0 %v1562_v0 }
  0xc2   : > { %969 = vmatprep.mubr.f32.mxu1 %v1562_v0  ;;  %v894_v0 = vld [vmem:[#allocation5 + $0x6d8] sm:$0xff] }
  0xc3   : > { %1329 = vmatpush1.bf16.msra.mxu1 %v1297_v5  ;;  %v1311_v23 = vpack.c.bf16 %v894_v0, %v892_v21 }
  0xc4   : > { %1298 = vmatpush1.bf16.msra.mxu0 %v1297_v5  ;;  %1322 = vmatprep.subr.bf16.mxu1 %v1299_v6 }
  0xc5   : > { %1300 = vmatprep.subr.bf16.mxu0 %v1299_v6 }
  0xc7   : > { %1330 = vmatpush1.bf16.msra.mxu1 %v1301_v11 }
  0xc8   : > { %1302 = vmatpush1.bf16.msra.mxu0 %v1301_v11  ;;  %1323 = vmatprep.subr.bf16.mxu1 %v1303_v12 }
  0xc9   : > { %1304 = vmatprep.subr.bf16.mxu0 %v1303_v12 }
  0xcb   : > { %1331 = vmatpush1.bf16.msra.mxu1 %v1305_v17 }
  0xcc   : > { %1306 = vmatpush1.bf16.msra.mxu0 %v1305_v17  ;;  %1324 = vmatprep.subr.bf16.mxu1 %v1307_v18 }
  0xcd   : > { %1308 = vmatprep.subr.bf16.mxu0 %v1307_v18 }
  0xcf   : > { %1332 = vmatpush1.bf16.msra.mxu1 %v1309_v22 }
  0xd0   : > { %1310 = vmatpush1.bf16.msra.mxu0 %v1309_v22  ;;  %1325 = vmatprep.subr.bf16.mxu1 %v1311_v23 }
  0xd1   : > { %1312 = vmatprep.subr.bf16.mxu0 %v1311_v23 }
  0xd3   : > { %1333 = vmatpush1.bf16.msra.mxu1 %v1313_v28 }
  0xd4   : > { %1314 = vmatpush1.bf16.msra.mxu0 %v1313_v28  ;;  %1326 = vmatprep.subr.bf16.mxu1 %v1315_v29 }
  0xd5   : > { %1316 = vmatprep.subr.bf16.mxu0 %v1315_v29 }
  0xd7   : > { %1334 = vmatpush1.bf16.msra.mxu1 %v1317_v32 }
  0xd8   : > { %1318 = vmatpush1.bf16.msra.mxu0 %v1317_v32 }
  0xda   : > { %970 = vmatmul.mubr.f32.vlgmr.msra.gmra.mrb[4].mxu1 %v865_v33 }
  0xdb   : > { %964 = vmatmul.mubr.f32.vlgmr.msra.gmra.mrb[0].mxu0 %v864_v34 }
 0x18d   : > { %v501_v35 = vpop.f32.mrb[0].mxu1 }
 0x18e   : > { %v503_v36 = vpop.f32.mrb[1].mxu1 }
 0x191   : > { %v507_v37 = vpop.f32.mrb[2].mxu1 }
 0x192   : > { %v855_v38 = vpop.f32.mrb[2].mxu0  ;;  %v509_v39 = vpop.f32.mrb[3].mxu1 }
 0x193   : > { %v1337_v40 = vadd.f32 %v855_v38, %v507_v37  ;;  %v857_v41 = vpop.f32.mrb[3].mxu0 }
 0x194   : > { %v1339_v42 = vadd.f32 %v857_v41, %v509_v39 }
 0x1ad   : > { %v971_v43 = vpop.f32.mrb[4].mxu1 }
 0x1ae   : > { %v965_v44 = vpop.f32.mrb[0].mxu0  ;;  %v1338_v45 = vadd.f32 %v1337_v40, %v971_v43  ;;  %v973_v46 = vpop.f32.mrb[5].mxu1 }
 0x1af   : > { %v1335_v47 = vadd.f32 %v965_v44, %v501_v35  ;;  %v967_v48 = vpop.f32.mrb[1].mxu0  ;;  %v1340_v49 = vadd.f32 %v1339_v42, %v973_v46 }
 0x1b0   : > { %982 = vst [vmem:[%s176_s17 + $0x10] sm:$0xff] %v1338_v45  ;;  %v1336_v50 = vadd.f32 %v967_v48, %v503_v36 }
 0x1b1   : > { %980 = vst [vmem:[%s176_s17] sm:$0xff] %v1335_v47  ;;  %983 = vst [vmem:[%s176_s17 + $0x18] sm:$0xff] %v1340_v49 }
 0x1b2   : > { %981 = vst [vmem:[%s176_s17 + $0x8] sm:$0xff] %v1336_v50 }
 0x1b3   : > { %1497 = shalt.err (!%p1494_p7)
}
 0x1b4   : > { %s1498_s24 = scalar_lea.hbm %s1769_s4, 512  ;;  %s1502_s26 = scalar_lea.hbm %s1815_s2, 1024 }
 0x1b5   : > { %p1499_p9 = scmp.ne.s32.totalorder %s1769_s4, %s1498_s24  ;;  %p1503_p5 = scmp.lt.u32.totalorder %s1769_s4, %s1815_s2 }
 0x1b6   : > { %p1504_p11 = scmp.lt.u32.totalorder %s1502_s26, %s1498_s24  ;;  %p1506_p4 = scmp.lt.u32.totalorder %s1498_s24, %s1769_s4 }
 0x1b7   : > { %p1500_p2 = pnand %p1499_p9, %p1672_p12 }
 0x1b8   : > { %p1505_p1 = por %p1504_p11, %p1503_p5 }
 0x1b9   : > { %p1501_p0 = pneg %p1500_p2 }
 0x1ba   : > { %p1507_p6 = por %p1506_p4, %p1505_p1 }
 0x1bc   : > { %p1508_p8 = pnand %p1507_p6, %p1501_p0 }
 0x1be   : > { %1511 = shalt.err (!%p1508_p8)
}
 0x1bf   : > { %s1564_s3 = smov 256   ;;  %s1565_s15 = smov 16  }
 0x1c0   : > { %1368 = dma.vmem_to_hbm [thread:$0]  (%p1672_p12), %s1764_s27, 512, %s1769_s4, %s985_s13, %s1564_s3, %s1564_s3, %s1565_s15  }
 0x1c1 PF: > { %s1013_s17 = sand.u32 1, %s1542_s9   ;;  %p1830_p10 = scmp.ne.s32.totalorder %s1820_s16, 0 }
 0x1c2   : > { %p1831_p13 = scmp.ge.s32.totalorder %s1554_s12, 2  ;;  %s1014_s19 = scalar_lea.sflag [#allocation4], %s1013_s17 }
 0x1c4   : > { %p1379_p3 = pnand %p1831_p13, %p1830_p10 }
 0x1c6   : > { %1537 = dma.done.wait (!%p1379_p3), %s1014_s19, 512  }
 0x1c7   : > { %1539 = vsyncadd (!%p1379_p3), %s1014_s19, 4294966784  ;;  %p16_p7 = scmp.ge.s32.totalorder %s1637_s21, 4   ;;  %s1832_s9 = smov %s1546_s10 }
 0x1c8   : > { %s1833_s10 = smov %s1550_s11  ;;  %s1834_s11 = smov %s1668_s8 }
 0x1c9   : > { %s1835_s12 = smov %s1637_s21  ;;  %18 = sbr.rel (!%p16_p7) target bundleno = 6 (0x6), region = 83 }
 0x1d0   :  { %1019 = vsyncpa [#allocation3], 1 }
 0x1d1   :  { %1021 = vsyncpa [#allocation3 + $0x1], 1 }
 0x1d2   :  { %1022 = vsyncpa [#allocation6], 1 }
 0x1d3   :  { %1023 = vsyncpa [#allocation4], 1 }
 0x1d4   :  { %1025 = vsyncpa [#allocation4 + $0x1], 1 }

</bundles_post_ra>
